<compile_context>
chip_gen: v7x
topology: tpu7x:2x2x1
jax: 0.10.0
libtpu: 0.0.40
codegen_flags: <defaults>
</compile_context>

<pallas_src>
import functools

import numpy as np
import jax
import jax.numpy as jnp
from jax import lax
from jax.experimental import pallas as pl
from jax.experimental.pallas import tpu as pltpu

# ---------------------------------------------------------------------------
# model dims (match nn.Module __init__)
# ---------------------------------------------------------------------------
EMB_GRID_VOCAB = 32
EMB_AGENT_VOCAB = 2
EMB_DIM = 4
FEAT_IN = 96          # (C*4 + 4) * H * W  must equal 96
FC_EMB_OUT = 128
HID = 256             # LSTM hidden
N_ACTIONS = 6         # env.action_space.n (synthetic)
PADDED_A = 128        # lane-dense padded action dim for the head output

_PROJ_VMEM_LIMIT = 32 * 1024 * 1024


def _round_up(x, m):
    return ((x + m - 1) // m) * m


# ---------------------------------------------------------------------------
# Kernel 1: batched input projection (all timesteps at once), bf16 MXU
#   gates_x = relu(x @ W_emb + b_emb) @ W_ih + (b_ih + b_hh)     -> bf16
# ---------------------------------------------------------------------------
def _proj_kernel(x_ref, wemb_ref, bemb_ref, wih_ref, bg_ref, gx_ref):
    emb = jnp.dot(x_ref[...], wemb_ref[...],
                  preferred_element_type=jnp.float32)              # (RM, 128)
    emb = jnp.maximum(emb + bemb_ref[...], 0.0)
    gx = jnp.dot(emb.astype(jnp.bfloat16), wih_ref[...],
                 preferred_element_type=jnp.float32) + bg_ref[...]  # (RM, 1024)
    gx_ref[...] = gx.astype(jnp.bfloat16)


def _run_projection(x2, w_emb, b_emb, w_ih, b_gates):
    R = x2.shape[0]
    RM = min(1024, _round_up(R, 16))          # big lane/sublane-friendly tiles
    R_pad = _round_up(R, RM)
    if R_pad != R:
        x2 = jnp.pad(x2, ((0, R_pad - R), (0, 0)))
    full = lambda shape: pl.BlockSpec(shape, lambda r: (0,) * len(shape))
    out = pl.pallas_call(
        _proj_kernel,
        out_shape=jax.ShapeDtypeStruct((R_pad, 4 * HID), jnp.bfloat16),
        grid_spec=pltpu.PrefetchScalarGridSpec(
            num_scalar_prefetch=0,
            grid=(R_pad // RM,),
            in_specs=[
                pl.BlockSpec((RM, FEAT_IN), lambda r: (r, 0)),   # x rows (bf16)
                full((FEAT_IN, FC_EMB_OUT)),                     # W_emb (bf16)
                full((1, FC_EMB_OUT)),                           # b_emb (f32)
                full((FC_EMB_OUT, 4 * HID)),                     # W_ih  (bf16)
                full((1, 4 * HID)),                              # b_ih + b_hh
            ],
            out_specs=pl.BlockSpec((RM, 4 * HID), lambda r: (r, 0)),
        ),
        compiler_params=pltpu.CompilerParams(
            dimension_semantics=("parallel",),
            vmem_limit_bytes=_PROJ_VMEM_LIMIT),
    )(x2, w_emb, b_emb, w_ih, b_gates)
    return out[:R]


# ---------------------------------------------------------------------------
# Kernel 2: sequential LSTM recurrence + fused head epilogue
# ---------------------------------------------------------------------------
def _lstm_head_kernel(gx_ref, lens_ref, h0_ref, c0_ref, whh_ref,
                      w1_ref, b1_ref, w2_ref, b2_ref,
                      p_ref, hn_ref, cn_ref,
                      hseq_ref, *, steps, unroll):
    chunk = pl.program_id(1)                      # time-chunk index

    @pl.when(chunk == 0)
    def _():
        hn_ref[...] = h0_ref[...]
        cn_ref[...] = c0_ref[...]

    lens = lens_ref[...]                          # (Bs, 1) int32 seq lengths
    t_base = chunk * steps

    # --- recurrence: only h @ W_hh + elementwise gates ---------------------
    def step(k, carry):
        h, c = carry                              # (Bs, 256) f32 each
        gates = gx_ref[k].astype(jnp.float32) + jnp.dot(
            h.astype(jnp.bfloat16), whh_ref[...],
            preferred_element_type=jnp.float32)
        # PyTorch gate order: i, f, g, o
        i_g = jax.nn.sigmoid(gates[:, 0 * HID:1 * HID])
        f_g = jax.nn.sigmoid(gates[:, 1 * HID:2 * HID])
        g_g = jnp.tanh(gates[:, 2 * HID:3 * HID])
        o_g = jax.nn.sigmoid(gates[:, 3 * HID:4 * HID])
        c_new = f_g * c + i_g * g_g
        h_new = o_g * jnp.tanh(c_new)

        # pack_padded_sequence semantics: state advances only while t < len[b]
        mask = (t_base + k) < lens                # (Bs, 1) bool
        hseq_ref[k] = jnp.where(mask, h_new, 0.0) # pad_packed: zero outputs
        h_next = jnp.where(mask, h_new, h)
        c_next = jnp.where(mask, c_new, c)
        return (h_next, c_next)

    h, c = lax.fori_loop(0, steps, step, (hn_ref[...], cn_ref[...]),
                         unroll=unroll)
    hn_ref[...] = h
    cn_ref[...] = c

    # --- fused head epilogue: fc1+ReLU, fc2 (128-lane padded), softmax -----
    def head(k, val):
        z = jnp.dot(hseq_ref[k].astype(jnp.bfloat16), w1_ref[...],
                    preferred_element_type=jnp.float32) + b1_ref[...]
        z = jnp.maximum(z, 0.0)
        logits = jnp.dot(z.astype(jnp.bfloat16), w2_ref[...],
                         preferred_element_type=jnp.float32) + b2_ref[...]
        logits = logits - jnp.max(logits, axis=-1, keepdims=True)
        e = jnp.exp(logits)                       # padded lanes -> exp(-huge)=0
        s = jnp.sum(e, axis=-1, keepdims=True)
        r = pl.reciprocal(s, approx=True)
        r = r * (2.0 - s * r)                     # one Newton step (EUP-based)
        p_ref[k] = e * r
        return val

    lax.fori_loop(0, steps, head, 0, unroll=unroll)


def _lstm_vmem_bytes(steps, Bs):
    resident = (HID * 4 * HID * 2             # W_hh bf16
                + HID * HID * 2               # W1 bf16
                + HID * PADDED_A * 2          # W2 (padded) bf16
                + (HID + PADDED_A + 4 * HID) * 4   # biases f32
                + 4 * Bs * HID * 4)           # h0, c0, h_n, c_n f32
    per_chunk = (2 * steps * Bs * 4 * HID * 2     # gates_x bf16, double-buffered
                 + 2 * steps * Bs * PADDED_A * 4  # probs out f32, double-buffered
                 + steps * Bs * HID * 4)          # hseq scratch f32
    return resident + per_chunk


def _pick_steps(Bs, max_len):
    budget = 40 * 1024 * 1024                 # fits v5e/v6e/v7x VMEM safely
    s = min(64, _round_up(max_len, 8))
    while s > 8 and _lstm_vmem_bytes(s, Bs) > budget:
        s -= 8
    return max(8, s)


def _run_lstm_head(gates_x, lens, h0, c0, w_hh, w1, b1, w2p, b2p, *,
                   steps, nsplit):
    t_pad, B, _ = gates_x.shape
    Bs = B // nsplit
    n_chunks = t_pad // steps
    # decouple unroll from chunk size to bound vreg pressure at large batch
    unroll = steps if Bs <= 16 else (8 if Bs <= 64 else 4)
    vmem_limit = int(min(56 * 2**20,
                         max(32 * 2**20, _lstm_vmem_bytes(steps, Bs) + 4 * 2**20)))
    full = lambda shape: pl.BlockSpec(shape, lambda p, i: (0,) * len(shape))
    kernel = functools.partial(_lstm_head_kernel, steps=steps, unroll=unroll)
    return pl.pallas_call(
        kernel,
        out_shape=(
            jax.ShapeDtypeStruct((t_pad, B, PADDED_A), jnp.float32),  # probs
            jax.ShapeDtypeStruct((B, HID), jnp.float32),              # h_n
            jax.ShapeDtypeStruct((B, HID), jnp.float32),              # c_n
        ),
        grid_spec=pltpu.PrefetchScalarGridSpec(
            num_scalar_prefetch=0,
            grid=(nsplit, n_chunks),          # batch halves parallel (v7x 2 TCs)
            in_specs=[
                pl.BlockSpec((steps, Bs, 4 * HID), lambda p, i: (i, p, 0)),
                # TODO(synk): lens could be scalar-prefetched into SMEM (minor).
                pl.BlockSpec((Bs, 1), lambda p, i: (p, 0)),
                pl.BlockSpec((Bs, HID), lambda p, i: (p, 0)),   # h0
                pl.BlockSpec((Bs, HID), lambda p, i: (p, 0)),   # c0
                full((HID, 4 * HID)),                           # W_hh bf16
                full((HID, HID)),                               # W1 bf16
                full((1, HID)),                                 # b1 f32
                full((HID, PADDED_A)),                          # W2 padded bf16
                full((1, PADDED_A)),                            # b2 padded f32
            ],
            out_specs=[
                pl.BlockSpec((steps, Bs, PADDED_A), lambda p, i: (i, p, 0)),
                pl.BlockSpec((Bs, HID), lambda p, i: (p, 0)),   # h_n carry
                pl.BlockSpec((Bs, HID), lambda p, i: (p, 0)),   # c_n carry
            ],
            scratch_shapes=[pltpu.VMEM((steps, Bs, HID), jnp.float32)],
        ),
        compiler_params=pltpu.CompilerParams(
            dimension_semantics=("parallel", "arbitrary"),
            vmem_limit_bytes=vmem_limit),
    )(gates_x, lens, h0, c0, w_hh, w1, b1, w2p, b2p)


# ---------------------------------------------------------------------------
# wrapper == module.forward
# ---------------------------------------------------------------------------
def forward(params, states, seq_lengths, in_hidden=None):
    grid_obs = states["grid"]                   # (T, B, H, W, C) int32
    agent = states["agent_id_grid"]             # (T, B, H, W)    int32
    T, B, Hh, Ww, C = grid_obs.shape
    CH = C * EMB_DIM + EMB_DIM                  # unified channel count (=16)
    assert CH * Hh * Ww == FEAT_IN, "obs spatial dims inconsistent with fc_emb"

    # pack_padded_sequence takes CPU lengths in PyTorch too; host values let us
    # trim to max(seq_lengths) with no device sync.
    seq_np = np.asarray(seq_lengths).astype(np.int32).reshape(B)
    max_len = int(seq_np.max())

    nsplit = 2 if (B % 32 == 0) else 1          # batch split for v7x dual TC
    Bs = B // nsplit
    steps = _pick_steps(Bs, max_len)
    t_pad = _round_up(max_len, steps)

    # --- embeddings + concat, natural (H,W,C) flatten (no XLA transpose) ---
    g = grid_obs[:max_len]
    a = agent[:max_len]
    grid_emb = params["grid_emb"][g].reshape(max_len, B, Hh, Ww, C * EMB_DIM)
    agent_emb = params["agent_emb"][a]                             # (.,B,H,W,4)
    unified = jnp.concatenate([grid_emb, agent_emb], axis=4)      # (.,B,H,W,CH)
    x = unified.reshape(max_len, B, FEAT_IN).astype(jnp.bfloat16)
    if t_pad > max_len:
        x = jnp.pad(x, ((0, t_pad - max_len), (0, 0), (0, 0)))

    # fold the permute(0,1,4,2,3) into W_emb's rows (x@W invariant under a
    # matched input/row permutation) — removes a T*B*96 activation transpose.
    hh, ww, cc = np.meshgrid(np.arange(Hh), np.arange(Ww), np.arange(CH),
                             indexing="ij")
    perm = (cc * (Hh * Ww) + hh * Ww + ww).reshape(-1)            # nat -> torch
    w_emb_nat = params["w_emb"][perm].astype(jnp.bfloat16)

    # --- hoisted input projection (fc_emb + x@W_ih + folded biases) --------
    b_gates = (params["b_ih"] + params["b_hh"]).astype(jnp.float32)
    gates_x = _run_projection(x.reshape(t_pad * B, FEAT_IN),
                              w_emb_nat,
                              params["b_emb"].astype(jnp.float32),
                              params["w_ih"].astype(jnp.bfloat16),
                              b_gates)
    gates_x = gates_x.reshape(t_pad, B, 4 * HID)                  # bf16

    # --- sequential LSTM recurrence + fused head ----------------------------
    if in_hidden is None:
        h0 = jnp.zeros((B, HID), jnp.float32)
        c0 = jnp.zeros((B, HID), jnp.float32)
    else:
        h0 = in_hidden[0].reshape(B, HID).astype(jnp.float32)
        c0 = in_hidden[1].reshape(B, HID).astype(jnp.float32)
    lens = jnp.asarray(seq_np).reshape(B, 1)                      # (B, 1) int32

    # pad fc2 to 128 lanes: zero weight columns, -1e30 bias so exp() -> 0
    w2p = jnp.zeros((HID, PADDED_A), jnp.float32).at[:, :N_ACTIONS].set(
        params["w2"])
    b2p = jnp.full((1, PADDED_A), -1e30, jnp.float32).at[0, :N_ACTIONS].set(
        params["b2"][0])

    probs, h_n, c_n = _run_lstm_head(
        gates_x, lens, h0, c0,
        params["w_hh"].astype(jnp.bfloat16),
        params["w1"].astype(jnp.bfloat16),
        params["b1"].astype(jnp.float32),
        w2p.astype(jnp.bfloat16),
        b2p,
        steps=steps, nsplit=nsplit)

    action_probs = probs[:max_len, :, :N_ACTIONS]
    out_hidden = (h_n.reshape(1, B, HID), c_n.reshape(1, B, HID))
    return action_probs, out_hidden


# ---------------------------------------------------------------------------
# deterministic synthetic parameters (shapes from __init__)
# ---------------------------------------------------------------------------
def init_params(key):
    ks = jax.random.split(key, 12)
    s = 0.1
    n = lambda k, shp: (s * jax.random.normal(k, shp)).astype(jnp.float32)
    return {
        "grid_emb": n(ks[0], (EMB_GRID_VOCAB, EMB_DIM)),
        "agent_emb": n(ks[1], (EMB_AGENT_VOCAB, EMB_DIM)),
        # linear weights stored as (in, out) so the kernels do x @ W + b
        "w_emb": n(ks[2], (FEAT_IN, FC_EMB_OUT)),
        "b_emb": n(ks[3], (1, FC_EMB_OUT)),
        "w_ih": n(ks[4], (FC_EMB_OUT, 4 * HID)),
        "b_ih": n(ks[5], (1, 4 * HID)),
        "w_hh": n(ks[6], (HID, 4 * HID)),
        "b_hh": n(ks[7], (1, 4 * HID)),
        "w1": n(ks[8], (HID, HID)),
        "b1": n(ks[9], (1, HID)),
        "w2": n(ks[10], (HID, N_ACTIONS)),
        "b2": n(ks[11], (1, N_ACTIONS)),
    }


if __name__ == "__main__":
    key = jax.random.PRNGKey(0)
    k_par, k_grid, k_agent = jax.random.split(key, 3)

    T, B, Hh, Ww, C = 8, 2, 2, 3, 3        # (C*4 + 4) * H * W = 16 * 6 = 96
    params = init_params(k_par)

    states = {
        "grid": jax.random.randint(k_grid, (T, B, Hh, Ww, C), 0, EMB_GRID_VOCAB,
                                   dtype=jnp.int32),
        "agent_id_grid": jax.random.randint(k_agent, (T, B, Hh, Ww), 0,
                                            EMB_AGENT_VOCAB, dtype=jnp.int32),
    }
    seq_lengths = np.array([T, 5], dtype=np.int32)   # ragged batch, max == T

    action_probs, (h_n, c_n) = forward(params, states, seq_lengths,
                                       in_hidden=None)
    jax.block_until_ready((action_probs, h_n, c_n))

    # sanity: shapes match PyTorch conventions, softmax rows sum to 1, finite
    row_sums = jnp.sum(action_probs, axis=-1)
    assert action_probs.shape == (T, B, N_ACTIONS)
    assert h_n.shape == (1, B, HID) and c_n.shape == (1, B, HID)
    assert bool(jnp.all(jnp.isfinite(action_probs)))
    assert bool(jnp.all(jnp.abs(row_sums - 1.0) < 1e-3))

    print("KERNEL_OK")
</pallas_src>

<mosaic_0001>
module attributes {stable_mosaic.version = 11 : i64} {
  func.func @_proj_kernel(%arg0: i32, %arg1: memref<16x96xbf16, #tpu.memory_space<vmem>>, %arg2: memref<96x128xbf16, #tpu.memory_space<vmem>>, %arg3: memref<1x128xf32, #tpu.memory_space<vmem>>, %arg4: memref<128x1024xbf16, #tpu.memory_space<vmem>>, %arg5: memref<1x1024xf32, #tpu.memory_space<vmem>>, %arg6: memref<16x1024xbf16, #tpu.memory_space<vmem>>) attributes {dimension_semantics = [#tpu.dimension_semantics<parallel>], iteration_bounds = array<i64: 1>, scalar_prefetch = 0 : i64, scratch_operands = 0 : i64, tpu.core_type = #tpu.core_type<tc>, window_params = [{transform_indices = @transform_0, window_bounds = array<i64: 16, 96>}, {pipeline_mode = #tpu.pipeline_mode<synchronous>, transform_indices = @transform_1, window_bounds = array<i64: 96, 128>}, {pipeline_mode = #tpu.pipeline_mode<synchronous>, transform_indices = @transform_2, window_bounds = array<i64: 1, 128>}, {pipeline_mode = #tpu.pipeline_mode<synchronous>, transform_indices = @transform_3, window_bounds = array<i64: 128, 1024>}, {pipeline_mode = #tpu.pipeline_mode<synchronous>, transform_indices = @transform_4, window_bounds = array<i64: 1, 1024>}, {transform_indices = @transform_5, window_bounds = array<i64: 16, 1024>}]} {
    %c0 = arith.constant 0 : index
    %c0_0 = arith.constant 0 : index
    %0 = vector.load %arg1[%c0, %c0_0] : memref<16x96xbf16, #tpu.memory_space<vmem>>, vector<16x96xbf16>
    %c0_1 = arith.constant 0 : index
    %c0_2 = arith.constant 0 : index
    %1 = vector.load %arg2[%c0_1, %c0_2] : memref<96x128xbf16, #tpu.memory_space<vmem>>, vector<96x128xbf16>
    %cst = arith.constant dense<0.000000e+00> : vector<16x128xf32>
    %2 = tpu.matmul %0, %1, %cst {dimension_numbers = #tpu.dot_dimension_numbers<[1], [0], [0], [1], [0, 0, 1, 1], [], []>} : vector<16x96xbf16>, vector<96x128xbf16>, vector<16x128xf32> -> vector<16x128xf32>
    %c0_3 = arith.constant 0 : index
    %c0_4 = arith.constant 0 : index
    %3 = vector.load %arg3[%c0_3, %c0_4] : memref<1x128xf32, #tpu.memory_space<vmem>>, vector<1x128xf32>
    %4 = vector.broadcast %3 : vector<1x128xf32> to vector<16x128xf32>
    %5 = arith.addf %2, %4 : vector<16x128xf32>
    %cst_5 = arith.constant 0.000000e+00 : f32
    %6 = vector.broadcast %cst_5 : f32 to vector<16x128xf32>
    %7 = arith.maximumf %5, %6 : vector<16x128xf32>
    %8 = arith.truncf %7 : vector<16x128xf32> to vector<16x128xbf16>
    %c0_6 = arith.constant 0 : index
    %c0_7 = arith.constant 0 : index
    %9 = vector.load %arg4[%c0_6, %c0_7] : memref<128x1024xbf16, #tpu.memory_space<vmem>>, vector<128x1024xbf16>
    %cst_8 = arith.constant dense<0.000000e+00> : vector<16x1024xf32>
    %10 = tpu.matmul %8, %9, %cst_8 {dimension_numbers = #tpu.dot_dimension_numbers<[1], [0], [0], [1], [0, 0, 1, 1], [], []>} : vector<16x128xbf16>, vector<128x1024xbf16>, vector<16x1024xf32> -> vector<16x1024xf32>
    %c0_9 = arith.constant 0 : index
    %c0_10 = arith.constant 0 : index
    %11 = vector.load %arg5[%c0_9, %c0_10] : memref<1x1024xf32, #tpu.memory_space<vmem>>, vector<1x1024xf32>
    %12 = vector.broadcast %11 : vector<1x1024xf32> to vector<16x1024xf32>
    %13 = arith.addf %10, %12 : vector<16x1024xf32>
    %14 = arith.truncf %13 : vector<16x1024xf32> to vector<16x1024xbf16>
    %c0_11 = arith.constant 0 : index
    %c0_12 = arith.constant 0 : index
    %15 = vector.load %arg6[%c0_11, %c0_12] : memref<16x1024xbf16, #tpu.memory_space<vmem>>, vector<16x1024xbf16>
    tpu.vector_store %arg6[%c0_11, %c0_12], %14 {strides = array<i32>} : memref<16x1024xbf16, #tpu.memory_space<vmem>>, vector<16x1024xbf16>,
    return
  }
  func.func @transform_0(%arg0: i32) -> (i32, i32) {
    %c0_i32 = arith.constant 0 : i32
    %c0_i32_0 = arith.constant 0 : i32
    return %arg0, %c0_i32 : i32, i32
  }
  func.func @transform_1(%arg0: i32) -> (i32, i32) {
    %c0_i32 = arith.constant 0 : i32
    %c0_i32_0 = arith.constant 0 : i32
    %c0_i32_1 = arith.constant 0 : i32
    return %c0_i32, %c0_i32_0 : i32, i32
  }
  func.func @transform_2(%arg0: i32) -> (i32, i32) {
    %c0_i32 = arith.constant 0 : i32
    %c0_i32_0 = arith.constant 0 : i32
    %c0_i32_1 = arith.constant 0 : i32
    return %c0_i32, %c0_i32_0 : i32, i32
  }
  func.func @transform_3(%arg0: i32) -> (i32, i32) {
    %c0_i32 = arith.constant 0 : i32
    %c0_i32_0 = arith.constant 0 : i32
    %c0_i32_1 = arith.constant 0 : i32
    return %c0_i32, %c0_i32_0 : i32, i32
  }
  func.func @transform_4(%arg0: i32) -> (i32, i32) {
    %c0_i32 = arith.constant 0 : i32
    %c0_i32_0 = arith.constant 0 : i32
    %c0_i32_1 = arith.constant 0 : i32
    return %c0_i32, %c0_i32_0 : i32, i32
  }
  func.func @transform_5(%arg0: i32) -> (i32, i32) {
    %c0_i32 = arith.constant 0 : i32
    %c0_i32_0 = arith.constant 0 : i32
    return %arg0, %c0_i32 : i32, i32
  }
}

</mosaic_0001>

<bundles_post_ra>
// kernel: tpu_custom_call.1
= control target key start
LH: loop header
LB: loop body
LE: loop exit
PB: predicated region body
PF: predicated region fallthrough
CT: control target
= control target key end

     0   :  { %10 = vsyncpa [#allocation3], 0  ;;  %s1183_s0 = inlined_call_operand.hbm [shape: bf16[16,96], index: 0, kind: input, shape index: {}]   ;;  %s1184_s1 = inlined_call_operand.hbm [shape: bf16[96,128], index: 1, kind: input, shape index: {}]   ;;  %s1185_s2 = inlined_call_operand.vmem [shape: f32[1,128], index: 2, kind: input, shape index: {}]   ;;  %s1186_s3 = inlined_call_operand.hbm [shape: bf16[128,1024], index: 3, kind: input, shape index: {}]   ;;  %s1187_s4 = inlined_call_operand.vmem [shape: f32[1,1024], index: 4, kind: input, shape index: {}]   ;;  %s1188_s5 = inlined_call_operand.hbm [shape: bf16[16,1024], index: 5, kind: output, shape index: {}]  }
   0x1   :  { %11 = vsyncpa [#allocation6], 0 }
   0x2   :  { %12 = vsyncpa [#allocation4], 0  ;;  %s1069_s18 = smov [#allocation5]   ;;  %s1070_s20 = smov [#allocation2]  }
   0x3   :  { %s30_s19 = sshll.u32 %s1069_s18, 4  ;;  %s18_s21 = sshll.u32 %s1070_s20, 4  ;;  %s31_s19 = int_to_ptr.vmem [resolvable:$true] %s30_s19  ;;  %s1110_s21 = int_to_ptr.vmem [resolvable:$true] %s18_s21 }
   0x4   :  { %s975_s24 = scalar_lea.hbm %s1184_s1, 768 }
   0x5   :  { %p976_p0 = scmp.ne.s32.totalorder %s1184_s1, %s975_s24  ;;  %p979_p1 = scmp.lt.u32.totalorder %s975_s24, %s1184_s1 }
   0x7   :  { %p981_p2 = pnand %p979_p1, %p976_p0 }
   0x9   :  { %984 = shalt.err (!%p981_p2)
}
   0xa   :  { %s985_s29 = scalar_lea.vmem %s31_s19, 768  ;;  %p990_p4 = scmp.lt.s32.totalorder %s31_s19, %s31_s19 }
   0xb   :  { %p986_p3 = scmp.ne.s32.totalorder %s31_s19, %s985_s29  ;;  %p991_p5 = scmp.lt.s32.totalorder %s985_s29, %s985_s29 }
   0xd   :  { %p992_p6 = por %p991_p5, %p990_p4 }
   0xf   :  { %p993_p7 = pnand %p992_p6, %p986_p3 }
  0x11   :  { %996 = shalt.err (!%p993_p7)
}
  0x12   :  { %s1071_s30 = smov 64   ;;  %s1072_s6 = smov 4  }
  0x13   :  { %36 = dma.hbm_to_vmem [thread:$0]  %s1184_s1, 768, %s31_s19, [#allocation6], %s1071_s30, %s1071_s30, %s1072_s6  }
  0x14   :  { %s997_s11 = scalar_lea.hbm %s1183_s0, 128 }
  0x15   :  { %p998_p8 = scmp.ne.s32.totalorder %s1183_s0, %s997_s11  ;;  %p1001_p9 = scmp.lt.u32.totalorder %s997_s11, %s1183_s0 }
  0x17   :  { %p1003_p10 = pnand %p1001_p9, %p998_p8 }
  0x19   :  { %1006 = shalt.err (!%p1003_p10)
}
  0x1a   :  { %s1007_s16 = scalar_lea.vmem %s1110_s21, 128  ;;  %p1012_p12 = scmp.lt.s32.totalorder %s1110_s21, %s1110_s21 }
  0x1b   :  { %p1008_p11 = scmp.ne.s32.totalorder %s1110_s21, %s1007_s16  ;;  %p1013_p13 = scmp.lt.s32.totalorder %s1007_s16, %s1007_s16 }
  0x1d   :  { %p1014_p0 = por %p1013_p13, %p1012_p12 }
  0x1f   :  { %p1015_p1 = pnand %p1014_p0, %p1008_p11 }
  0x21   :  { %1018 = shalt.err (!%p1015_p1)
}
  0x22   :  { %24 = dma.hbm_to_vmem [thread:$0]  %s1183_s0, 128, %s1110_s21, [#allocation3], %s1071_s30, %s1071_s30, %s1072_s6  }
  0x23   :  { %s1073_s18 = smov [#allocation7]   ;;  %s1019_s23 = scalar_lea.hbm %s1186_s3, 8192 }
  0x24   :  { %s44_s19 = sshll.u32 %s1073_s18, 4  ;;  %p1020_p2 = scmp.ne.s32.totalorder %s1186_s3, %s1019_s23  ;;  %s45_s19 = int_to_ptr.vmem [resolvable:$true] %s44_s19 }
  0x25   :  { %p1023_p3 = scmp.lt.u32.totalorder %s1019_s23, %s1186_s3 }
  0x27   :  { %p1025_p4 = pnand %p1023_p3, %p1020_p2 }
  0x29   :  { %1028 = shalt.err (!%p1025_p4)
}
  0x2a   :  { %s1029_s28 = scalar_lea.vmem %s45_s19, 8192  ;;  %p1034_p6 = scmp.lt.s32.totalorder %s45_s19, %s45_s19 }
  0x2b   :  { %p1030_p5 = scmp.ne.s32.totalorder %s45_s19, %s1029_s28  ;;  %p1035_p7 = scmp.lt.s32.totalorder %s1029_s28, %s1029_s28 }
  0x2d   :  { %p1036_p8 = por %p1035_p7, %p1034_p6 }
  0x2f   :  { %p1037_p9 = pnand %p1036_p8, %p1030_p5 }
  0x31   :  { %1040 = shalt.err (!%p1037_p9)
}
  0x32   :  { %s1074_s0 = smov 512   ;;  %s1075_s21 = smov 32  }
  0x33   :  { %50 = dma.hbm_to_vmem [thread:$0]  %s1186_s3, 8192, %s45_s19, [#allocation6], %s1074_s0, %s1074_s0, %s1075_s21  }
  0x34   :  { %1063 = dma.done.wait [#allocation3], 128  }
  0x35   :  { %1064 = vsyncadd [#allocation3], 4294967168 }
  0x36   :  { %1065 = dma.done.wait [#allocation6], 8960  }
  0x37   :  { %1066 = vsyncadd [#allocation6], 4294958336  ;;  %v1076_v0 = vmov 0.0   ;;  %vm1077_vm0 = vmmov 0   ;;  %v968_v1 = vld [vmem:[#allocation5] sm:$0xff]   ;;  %v969_v2 = vld [vmem:[#allocation5 + $0x8] sm:$0xff]  }
  0x38   :  { %941 = vmatprep.subr.bf16.mxu0 %v1076_v0  ;;  %953 = vmatprep.mubr.msk.bf16.mxu0 %vm1077_vm0, %v1076_v0  ;;  %v970_v3 = vld [vmem:[#allocation5 + $0x10] sm:$0xff]   ;;  %v971_v12 = vld [vmem:[#allocation5 + $0x18] sm:$0xff]   ;;  %v972_v18 = vld [vmem:[#allocation5 + $0x20] sm:$0xff]   ;;  %vm125_vm1 = vcmask 785408  }
  0x39   :  { %942 = vmatpush3.bf16.msra.mxu0 %v968_v1  ;;  %v173_v4 = vld [vmem:[#allocation7] sm:$0xff]  ;;  %v174_v20 = vld [vmem:[#allocation7 + $0x8] sm:$0xff]  ;;  %v973_v25 = vld [vmem:[#allocation5 + $0x28] sm:$0xff]  }
  0x3a   :  { %943 = vmatprep.subr.bf16.mxu0 %v1076_v0  ;;  %v177_v5 = vld [vmem:[#allocation7 + $0x20] sm:$0xff]  ;;  %v178_v21 = vld [vmem:[#allocation7 + $0x28] sm:$0xff] }
  0x3b   :  { %v855_v6 = vcombine.high %v173_v4, %v177_v5  ;;  %v854_v7 = vcombine.low %v173_v4, %v177_v5  ;;  %v181_v8 = vld [vmem:[#allocation7 + $0x40] sm:$0xff]  ;;  %v857_v26 = vcombine.high %v174_v20, %v178_v21  ;;  %v182_v28 = vld [vmem:[#allocation7 + $0x48] sm:$0xff]  ;;  %v856_v34 = vcombine.low %v174_v20, %v178_v21 }
  0x3c   :  { %v185_v9 = vld [vmem:[#allocation7 + $0x60] sm:$0xff]  ;;  %v186_v29 = vld [vmem:[#allocation7 + $0x68] sm:$0xff] }
  0x3d   :  { %944 = vmatpush3.bf16.msra.mxu0 %v969_v2  ;;  %v863_v10 = vcombine.high %v181_v8, %v185_v9  ;;  %v189_v11 = vld [vmem:[#allocation7 + $0x80] sm:$0xff]  ;;  %599 = vmatprep.subr.bf16.mxu1 %v855_v6  ;;  %v862_v14 = vcombine.low %v181_v8, %v185_v9  ;;  %v974_v31 = vld [vmem:[#allocation2] sm:$0xff]   ;;  %v865_v35 = vcombine.high %v182_v28, %v186_v29  ;;  %v175_v8 = vld [vmem:[#allocation7 + $0x10] sm:$0xff] }
  0x3e   :  { %945 = vmatprep.subr.bf16.mxu0 %v1076_v0  ;;  %v193_v13 = vld [vmem:[#allocation7 + $0xa0] sm:$0xff]  ;;  %600 = vmatpush1.bf16.msra.mxu1 %v854_v7  ;;  %v190_v37 = vld [vmem:[#allocation7 + $0x88] sm:$0xff]  ;;  %v864_v40 = vcombine.low %v182_v28, %v186_v29  ;;  %v179_v9 = vld [vmem:[#allocation7 + $0x30] sm:$0xff] }
  0x3f   :  { %601 = vmatprep.subr.bf16.mxu1 %v863_v10  ;;  %v871_v15 = vcombine.high %v189_v11, %v193_v13  ;;  %v197_v16 = vld [vmem:[#allocation7 + $0xc0] sm:$0xff]  ;;  %v870_v19 = vcombine.low %v189_v11, %v193_v13  ;;  %v194_v38 = vld [vmem:[#allocation7 + $0xa8] sm:$0xff]  ;;  %v176_v10 = vld [vmem:[#allocation7 + $0x18] sm:$0xff]  ;;  %v859_v11 = vcombine.high %v175_v8, %v179_v9  ;;  %v858_v13 = vcombine.low %v175_v8, %v179_v9 }
  0x40   :  { %v201_v17 = vld [vmem:[#allocation7 + $0xe0] sm:$0xff]  ;;  %v873_v41 = vcombine.high %v190_v37, %v194_v38  ;;  %v198_v43 = vld [vmem:[#allocation7 + $0xc8] sm:$0xff]  ;;  %v872_v45 = vcombine.low %v190_v37, %v194_v38  ;;  %v231_v9 = vld [vmem:[#allocation7 + $0x1d0] sm:$0xff] }
  0x41   :  { %946 = vmatpush3.bf16.msra.mxu0 %v970_v3  ;;  %v879_v22 = vcombine.high %v197_v16, %v201_v17  ;;  %v205_v23 = vld [vmem:[#allocation7 + $0x100] sm:$0xff]  ;;  %v878_v27 = vcombine.low %v197_v16, %v201_v17  ;;  %v202_v44 = vld [vmem:[#allocation7 + $0xe8] sm:$0xff]  ;;  %v1078_v16 = vmov 0  }
  0x42   :  { %947 = vmatprep.subr.bf16.mxu0 %v1076_v0  ;;  %602 = vmatpush1.bf16.msra.mxu1 %v862_v14  ;;  %v209_v24 = vld [vmem:[#allocation7 + $0x120] sm:$0xff]  ;;  %v881_v46 = vcombine.high %v198_v43, %v202_v44  ;;  %v206_v47 = vld [vmem:[#allocation7 + $0x108] sm:$0xff]  ;;  %v880_v49 = vcombine.low %v198_v43, %v202_v44  ;;  %v200_v43 = vld [vmem:[#allocation7 + $0xd8] sm:$0xff] }
  0x43   :  { %603 = vmatprep.subr.bf16.mxu1 %v871_v15  ;;  %v887_v30 = vcombine.high %v205_v23, %v209_v24  ;;  %v213_v32 = vld [vmem:[#allocation7 + $0x140] sm:$0xff]  ;;  %v886_v36 = vcombine.low %v205_v23, %v209_v24  ;;  %v210_v48 = vld [vmem:[#allocation7 + $0x128] sm:$0xff]  ;;  %631 = vmatprep.mubr.bf16.mxu1 %v1078_v16  ;;  %v183_v24 = vld [vmem:[#allocation7 + $0x50] sm:$0xff] }
  0x44   :  { %v217_v33 = vld [vmem:[#allocation7 + $0x160] sm:$0xff]  ;;  %v889_v50 = vcombine.high %v206_v47, %v210_v48  ;;  %v214_v51 = vld [vmem:[#allocation7 + $0x148] sm:$0xff]  ;;  %v888_v53 = vcombine.low %v206_v47, %v210_v48  ;;  %v204_v44 = vld [vmem:[#allocation7 + $0xf8] sm:$0xff] }
  0x45   :  { %948 = vmatpush3.bf16.msra.mxu0 %v971_v12  ;;  %v895_v39 = vcombine.high %v213_v32, %v217_v33  ;;  %v894_v42 = vcombine.low %v213_v32, %v217_v33  ;;  %v218_v52 = vld [vmem:[#allocation7 + $0x168] sm:$0xff]  ;;  %v221_v56 = vld [vmem:[#allocation7 + $0x180] sm:$0xff]  ;;  %v180_v12 = vld [vmem:[#allocation7 + $0x38] sm:$0xff]  ;;  %v885_v48 = vcombine.high %v200_v43, %v204_v44 }
  0x46   :  { %949 = vmatprep.subr.bf16.mxu0 %v1076_v0  ;;  %604 = vmatpush1.bf16.msra.mxu1 %v870_v19  ;;  %v897_v54 = vcombine.high %v214_v51, %v218_v52  ;;  %v896_v55 = vcombine.low %v214_v51, %v218_v52  ;;  %v225_v57 = vld [vmem:[#allocation7 + $0x1a0] sm:$0xff]  ;;  %v222_v58 = vld [vmem:[#allocation7 + $0x188] sm:$0xff]  ;;  %v860_v14 = vcombine.low %v176_v10, %v180_v12  ;;  %v191_v33 = vld [vmem:[#allocation7 + $0x90] sm:$0xff] }
  0x47   :  { %605 = vmatprep.subr.bf16.mxu1 %v879_v22  ;;  %v903_v59 = vcombine.high %v221_v56, %v225_v57  ;;  %v226_v60 = vld [vmem:[#allocation7 + $0x1a8] sm:$0xff]  ;;  %v902_v63 = vcombine.low %v221_v56, %v225_v57  ;;  %v233_v1 = vld [vmem:[#allocation7 + $0x1e0] sm:$0xff]  ;;  %v861_v15 = vcombine.high %v176_v10, %v180_v12  ;;  %v208_v51 = vld [vmem:[#allocation7 + $0x118] sm:$0xff] }
  0x48   :  { %v904_v61 = vcombine.low %v222_v58, %v226_v60  ;;  %v905_v62 = vcombine.high %v222_v58, %v226_v60  ;;  %v230_v2 = vld [vmem:[#allocation7 + $0x1c8] sm:$0xff]  ;;  %v212_v52 = vld [vmem:[#allocation7 + $0x138] sm:$0xff]  ;;  %v215_v57 = vld [vmem:[#allocation7 + $0x150] sm:$0xff] }
  0x49   :  { %950 = vmatpush3.bf16.msra.mxu0 %v972_v18  ;;  %v234_v4 = vld [vmem:[#allocation7 + $0x1e8] sm:$0xff]  ;;  %v893_v56 = vcombine.high %v208_v51, %v212_v52  ;;  %v219_v58 = vld [vmem:[#allocation7 + $0x170] sm:$0xff]  ;;  %v220_v60 = vld [vmem:[#allocation7 + $0x178] sm:$0xff] }
  0x4a   :  { %951 = vmatprep.subr.bf16.mxu0 %v1076_v0  ;;  %606 = vmatpush1.bf16.msra.mxu1 %v878_v27  ;;  %v229_v0 = vld [vmem:[#allocation7 + $0x1c0] sm:$0xff]  ;;  %v912_v5 = vcombine.low %v230_v2, %v234_v4  ;;  %v913_v6 = vcombine.high %v230_v2, %v234_v4  ;;  %v845_v17 = vld [vmem:[%s1185_s2] ss:$0 sm:$0xff]  ;;  %v188_v27 = vld [vmem:[#allocation7 + $0x78] sm:$0xff] }
  0x4b   :  { %607 = vmatprep.subr.bf16.mxu1 %v887_v30  ;;  %v911_v3 = vcombine.high %v229_v0, %v233_v1  ;;  %v910_v7 = vcombine.low %v229_v0, %v233_v1  ;;  %v223_v1 = vld [vmem:[#allocation7 + $0x190] sm:$0xff]  ;;  %v228_v4 = vld [vmem:[#allocation7 + $0x1b8] sm:$0xff] }
  0x4c   :  { %v227_v2 = vld [vmem:[#allocation7 + $0x1b0] sm:$0xff]  ;;  %v236_v12 = vld [vmem:[#allocation7 + $0x1f8] sm:$0xff] }
  0x4d   :  { %952 = vmatpush3.bf16.msra.mxu0 %v973_v25  ;;  %v187_v25 = vld [vmem:[#allocation7 + $0x70] sm:$0xff] }
  0x4e   :  { %642 = vmatprep.subr.bf16.mxu0 %v857_v26  ;;  %608 = vmatpush1.bf16.msra.mxu1 %v886_v36  ;;  %v184_v26 = vld [vmem:[#allocation7 + $0x58] sm:$0xff]  ;;  %v866_v37 = vcombine.low %v183_v24, %v187_v25  ;;  %v235_v10 = vld [vmem:[#allocation7 + $0x1f0] sm:$0xff] }
  0x4f   :  { %609 = vmatprep.subr.bf16.mxu1 %v895_v39  ;;  %v869_v32 = vcombine.high %v184_v26, %v188_v27  ;;  %v196_v36 = vld [vmem:[#allocation7 + $0xb8] sm:$0xff]  ;;  %v868_v38 = vcombine.low %v184_v26, %v188_v27 }
  0x50   :  { %954 = vmatmul.mubr.msk.bf16.vlgmr.msra.gmra.mrb[0].mxu0 %vm125_vm1, %v974_v31  ;;  %v867_v31 = vcombine.high %v183_v24, %v187_v25 }
  0x51   :  { %643 = vmatpush1.bf16.msra.mxu0 %v856_v34  ;;  %674 = vmatprep.mubr.bf16.mxu0 %v1078_v16  ;;  %v195_v34 = vld [vmem:[#allocation7 + $0xb0] sm:$0xff] }
  0x52   :  { %644 = vmatprep.subr.bf16.mxu0 %v865_v35  ;;  %610 = vmatpush1.bf16.msra.mxu1 %v894_v42  ;;  %v192_v35 = vld [vmem:[#allocation7 + $0x98] sm:$0xff]  ;;  %v875_v39 = vcombine.high %v191_v33, %v195_v34  ;;  %v203_v42 = vld [vmem:[#allocation7 + $0xf0] sm:$0xff] }
  0x53   :  { %611 = vmatprep.subr.bf16.mxu1 %v903_v59  ;;  %v216_v59 = vld [vmem:[#allocation7 + $0x158] sm:$0xff] }
  0x54   :  { %v901_v0 = vcombine.high %v216_v59, %v220_v60 }
  0x55   :  { %645 = vmatpush1.bf16.msra.mxu0 %v864_v40  ;;  %v877_v40 = vcombine.high %v192_v35, %v196_v36 }
  0x56   :  { %646 = vmatprep.subr.bf16.mxu0 %v873_v41  ;;  %612 = vmatpush1.bf16.msra.mxu1 %v902_v63  ;;  %v199_v41 = vld [vmem:[#allocation7 + $0xd0] sm:$0xff]  ;;  %v899_v63 = vcombine.high %v215_v57, %v219_v58 }
  0x57   :  { %613 = vmatprep.subr.bf16.mxu1 %v911_v3  ;;  %v883_v47 = vcombine.high %v199_v41, %v203_v42  ;;  %v224_v3 = vld [vmem:[#allocation7 + $0x198] sm:$0xff] }
  0x58   :  { %v909_v8 = vcombine.high %v224_v3, %v228_v4 }
  0x59   :  { %647 = vmatpush1.bf16.msra.mxu0 %v872_v45  ;;  %v874_v45 = vcombine.low %v191_v33, %v195_v34 }
  0x5a   :  { %648 = vmatprep.subr.bf16.mxu0 %v881_v46  ;;  %614 = vmatpush1.bf16.msra.mxu1 %v910_v7  ;;  %v876_v46 = vcombine.low %v192_v35, %v196_v36  ;;  %v907_v7 = vcombine.high %v223_v1, %v227_v2 }
  0x5b   :  { %685 = vmatprep.subr.bf16.mxu1 %v859_v11  ;;  %v232_v11 = vld [vmem:[#allocation7 + $0x1d8] sm:$0xff] }
  0x5d   :  { %649 = vmatpush1.bf16.msra.mxu0 %v880_v49  ;;  %v207_v49 = vld [vmem:[#allocation7 + $0x110] sm:$0xff] }
  0x5e   :  { %650 = vmatprep.subr.bf16.mxu0 %v889_v50  ;;  %v211_v50 = vld [vmem:[#allocation7 + $0x130] sm:$0xff] }
  0x61   :  { %651 = vmatpush1.bf16.msra.mxu0 %v888_v53  ;;  %v882_v53 = vcombine.low %v199_v41, %v203_v42 }
  0x62   :  { %652 = vmatprep.subr.bf16.mxu0 %v897_v54  ;;  %v884_v54 = vcombine.low %v200_v43, %v204_v44 }
  0x65   :  { %653 = vmatpush1.bf16.msra.mxu0 %v896_v55  ;;  %v891_v55 = vcombine.high %v207_v49, %v211_v50 }
  0x66   :  { %654 = vmatprep.subr.bf16.mxu0 %v905_v62  ;;  %v892_v62 = vcombine.low %v208_v51, %v212_v52 }
  0x69   :  { %655 = vmatpush1.bf16.msra.mxu0 %v904_v61  ;;  %v890_v61 = vcombine.low %v207_v49, %v211_v50 }
  0x6a   :  { %656 = vmatprep.subr.bf16.mxu0 %v913_v6  ;;  %v900_v6 = vcombine.low %v216_v59, %v220_v60 }
  0x6d   :  { %657 = vmatpush1.bf16.msra.mxu0 %v912_v5  ;;  %v898_v5 = vcombine.low %v215_v57, %v219_v58 }
  0x6e   :  { %728 = vmatprep.subr.bf16.mxu0 %v861_v15  ;;  %v915_v15 = vcombine.high %v231_v9, %v235_v10 }
 0x123   :  { %v163_v18 = vpop.f32.mrb[0].mxu0 }
 0x124   :  { %v164_v19 = vadd.f32 %v845_v17, %v163_v18  ;;  %v955_v20 = vpop.f32.mrb[1].mxu0  ;;  %v916_v18 = vcombine.low %v232_v11, %v236_v12 }
 0x125   :  { %v166_v21 = vpop.f32.mrb[2].mxu0 }
 0x126   :  { %v167_v22 = vadd.f32 %v845_v17, %v166_v21  ;;  %v956_v23 = vpop.f32.mrb[3].mxu0  ;;  %v170_v28 = vmax.f32 %v164_v19, 0.0  ;;  %v914_v17 = vcombine.low %v231_v9, %v235_v10  ;;  %v239_v19 = vlaneseq }
 0x127   :  { %v237_v23 = vld [vmem:[%s1187_s4] sm:$0xff]  ;;  %s1079_s4 = smov [#allocation8]  }
 0x128   :  { %v171_v29 = vmax.f32 %v167_v22, 0.0  ;;  %v240_v20 = vshrl.u32 %v239_v19, 7  ;;  %s832_s8 = sshll.u32 %s1079_s4, 4  ;;  %s833_s8 = int_to_ptr.vmem [resolvable:$true] %s832_s8 }
 0x129   :  { %s1041_s9 = scalar_lea.vmem %s833_s8, 1024  ;;  %p1046_p11 = scmp.lt.s32.totalorder %s833_s8, %s833_s8 }
 0x12a   :  { %v1159_v30 = vpack.c.bf16 %v171_v29, %v170_v28  ;;  %v241_v21 = vsub.s32 0, %v240_v20  ;;  %v249_v22 = vsub.s32 2, %v240_v20  ;;  %v245_v24 = vsub.s32 1, %v240_v20  ;;  %p1042_p10 = scmp.ne.s32.totalorder %s833_s8, %s1041_s9  ;;  %p1047_p12 = scmp.lt.s32.totalorder %s1041_s9, %s1041_s9 }
 0x12b   :  { %v253_v25 = vsub.s32 3, %v240_v20  ;;  %v257_v50 = vsub.s32 4, %v240_v20  ;;  %v265_v51 = vsub.s32 6, %v240_v20  ;;  %v261_v52 = vsub.s32 5, %v240_v20 }
 0x12c   :  { %632 = vmatmul.mubr.bf16.vlgmr.msra.gmra.mrb[0].mxu1 %v1159_v30  ;;  %675 = vmatmul.mubr.bf16.vlgmr.msra.gmra.mrb[4].mxu0 %v1159_v30  ;;  %v242_v26 = vrot.slane %v237_v23, %v241_v21  ;;  %v250_v27 = vrot.slane %v237_v23, %v249_v22  ;;  %v246_v28 = vrot.slane %v237_v23, %v245_v24  ;;  %p1048_p13 = por %p1047_p12, %p1046_p11 }
 0x12d   :  { %686 = vmatpush1.bf16.msra.mxu1 %v858_v13  ;;  %729 = vmatpush1.bf16.msra.mxu0 %v860_v14  ;;  %v906_v13 = vcombine.low %v223_v1, %v227_v2  ;;  %v908_v14 = vcombine.low %v224_v3, %v228_v4  ;;  %v254_v29 = vrot.slane %v237_v23, %v253_v25 }
 0x12e   :  { %687 = vmatprep.subr.bf16.mxu1 %v867_v31  ;;  %730 = vmatprep.subr.bf16.mxu0 %v869_v32  ;;  %p1049_p0 = pnand %p1048_p13, %p1042_p10 }
 0x12f   :  { %717 = vmatprep.mubr.bf16.mxu1 %v1078_v16  ;;  %760 = vmatprep.mubr.bf16.mxu0 %v1078_v16  ;;  %v917_v16 = vcombine.high %v232_v11, %v236_v12 }
 0x131   :  { %688 = vmatpush1.bf16.msra.mxu1 %v866_v37  ;;  %731 = vmatpush1.bf16.msra.mxu0 %v868_v38 }
 0x132   :  { %689 = vmatprep.subr.bf16.mxu1 %v875_v39  ;;  %732 = vmatprep.subr.bf16.mxu0 %v877_v40 }
 0x135   :  { %690 = vmatpush1.bf16.msra.mxu1 %v874_v45  ;;  %733 = vmatpush1.bf16.msra.mxu0 %v876_v46 }
 0x136   :  { %691 = vmatprep.subr.bf16.mxu1 %v883_v47  ;;  %734 = vmatprep.subr.bf16.mxu0 %v885_v48 }
 0x139   :  { %692 = vmatpush1.bf16.msra.mxu1 %v882_v53  ;;  %735 = vmatpush1.bf16.msra.mxu0 %v884_v54  ;;  %v269_v53 = vsub.s32 7, %v240_v20  ;;  %v258_v54 = vrot.slane %v237_v23, %v257_v50 }
 0x13a   :  { %693 = vmatprep.subr.bf16.mxu1 %v891_v55  ;;  %736 = vmatprep.subr.bf16.mxu0 %v893_v56  ;;  %v266_v55 = vrot.slane %v237_v23, %v265_v51  ;;  %v262_v56 = vrot.slane %v237_v23, %v261_v52 }
 0x13b   :  { %v270_v57 = vrot.slane %v237_v23, %v269_v53 }
 0x13d   :  { %694 = vmatpush1.bf16.msra.mxu1 %v890_v61  ;;  %737 = vmatpush1.bf16.msra.mxu0 %v892_v62 }
 0x13e   :  { %695 = vmatprep.subr.bf16.mxu1 %v899_v63  ;;  %738 = vmatprep.subr.bf16.mxu0 %v901_v0 }
 0x141   :  { %696 = vmatpush1.bf16.msra.mxu1 %v898_v5  ;;  %739 = vmatpush1.bf16.msra.mxu0 %v900_v6 }
 0x142   :  { %697 = vmatprep.subr.bf16.mxu1 %v907_v7  ;;  %740 = vmatprep.subr.bf16.mxu0 %v909_v8 }
 0x145   :  { %698 = vmatpush1.bf16.msra.mxu1 %v906_v13  ;;  %741 = vmatpush1.bf16.msra.mxu0 %v908_v14 }
 0x146   :  { %699 = vmatprep.subr.bf16.mxu1 %v915_v15  ;;  %742 = vmatprep.subr.bf16.mxu0 %v917_v16 }
 0x149   :  { %700 = vmatpush1.bf16.msra.mxu1 %v914_v17  ;;  %743 = vmatpush1.bf16.msra.mxu0 %v916_v18 }
 0x14c   :  { %718 = vmatmul.mubr.bf16.vlgmr.msra.gmra.mrb[4].mxu1 %v1159_v30  ;;  %761 = vmatmul.mubr.bf16.vlgmr.msra.gmra.mrb[8].mxu0 %v1159_v30 }
 0x1ff   :  { %v633_v31 = vpop.f32.mrb[0].mxu1  ;;  %v676_v32 = vpop.f32.mrb[4].mxu0 }
 0x200   :  { %v634_v33 = vadd.f32 %v633_v31, %v242_v26  ;;  %v677_v34 = vadd.f32 %v676_v32, %v250_v27  ;;  %v635_v35 = vpop.f32.mrb[1].mxu1  ;;  %v678_v30 = vpop.f32.mrb[5].mxu0 }
 0x201   :  { %v636_v36 = vadd.f32 %v635_v35, %v246_v28  ;;  %v679_v37 = vadd.f32 %v678_v30, %v254_v29  ;;  %v637_v38 = vpop.f32.mrb[2].mxu1  ;;  %v680_v39 = vpop.f32.mrb[6].mxu0 }
 0x202   :  { %v638_v40 = vadd.f32 %v637_v38, %v242_v26  ;;  %v681_v41 = vadd.f32 %v680_v39, %v250_v27  ;;  %v639_v42 = vpop.f32.mrb[3].mxu1  ;;  %v682_v43 = vpop.f32.mrb[7].mxu0 }
 0x203   :  { %v926_v44 = vpack.c.bf16 %v636_v36, %v634_v33  ;;  %v927_v45 = vpack.c.bf16 %v679_v37, %v677_v34  ;;  %v640_v46 = vadd.f32 %v639_v42, %v246_v28  ;;  %v683_v47 = vadd.f32 %v682_v43, %v254_v29 }
 0x205   :  { %819 = vst [vmem:[#allocation8] sm:$0xff] %v926_v44  ;;  %820 = vst [vmem:[#allocation8 + $0x8] sm:$0xff] %v927_v45  ;;  %v930_v48 = vpack.c.bf16 %v640_v46, %v638_v40  ;;  %v931_v49 = vpack.c.bf16 %v683_v47, %v681_v41 }
 0x207   :  { %823 = vst [vmem:[#allocation8 + $0x20] sm:$0xff] %v930_v48  ;;  %824 = vst [vmem:[#allocation8 + $0x28] sm:$0xff] %v931_v49 }
 0x21f   :  { %v719_v58 = vpop.f32.mrb[4].mxu1  ;;  %v762_v59 = vpop.f32.mrb[8].mxu0 }
 0x220   :  { %v720_v60 = vadd.f32 %v719_v58, %v258_v54  ;;  %v763_v61 = vadd.f32 %v762_v59, %v266_v55  ;;  %v721_v62 = vpop.f32.mrb[5].mxu1  ;;  %v764_v63 = vpop.f32.mrb[9].mxu0 }
 0x221   :  { %v722_v0 = vadd.f32 %v721_v62, %v262_v56  ;;  %v765_v1 = vadd.f32 %v764_v63, %v270_v57  ;;  %v723_v2 = vpop.f32.mrb[6].mxu1  ;;  %v766_v3 = vpop.f32.mrb[10].mxu0 }
 0x222   :  { %v724_v4 = vadd.f32 %v723_v2, %v258_v54  ;;  %v767_v5 = vadd.f32 %v766_v3, %v266_v55  ;;  %v725_v6 = vpop.f32.mrb[7].mxu1  ;;  %v768_v7 = vpop.f32.mrb[11].mxu0 }
 0x223   :  { %v928_v8 = vpack.c.bf16 %v722_v0, %v720_v60  ;;  %v929_v9 = vpack.c.bf16 %v765_v1, %v763_v61  ;;  %v726_v10 = vadd.f32 %v725_v6, %v262_v56  ;;  %v769_v11 = vadd.f32 %v768_v7, %v270_v57 }
 0x225   :  { %821 = vst [vmem:[#allocation8 + $0x10] sm:$0xff] %v928_v8  ;;  %822 = vst [vmem:[#allocation8 + $0x18] sm:$0xff] %v929_v9  ;;  %v932_v12 = vpack.c.bf16 %v726_v10, %v724_v4  ;;  %v933_v13 = vpack.c.bf16 %v769_v11, %v767_v5 }
 0x227   :  { %825 = vst [vmem:[#allocation8 + $0x30] sm:$0xff] %v932_v12  ;;  %826 = vst [vmem:[#allocation8 + $0x38] sm:$0xff] %v933_v13 }
 0x228   :  { %1052 = shalt.err (!%p1049_p0)
}
 0x229   :  { %s1053_s12 = scalar_lea.hbm %s1188_s5, 1024 }
 0x22a   :  { %p1054_p1 = scmp.ne.s32.totalorder %s1188_s5, %s1053_s12  ;;  %p1057_p2 = scmp.lt.u32.totalorder %s1053_s12, %s1188_s5 }
 0x22c   :  { %p1059_p3 = pnand %p1057_p2, %p1054_p1 }
 0x22e   :  { %1062 = shalt.err (!%p1059_p3)
}
 0x22f   :  { %838 = dma.vmem_to_hbm [thread:$0]  %s833_s8, 1024, %s1188_s5, [#allocation4], %s1074_s0, %s1074_s0, %s1075_s21  }
 0x230   :  { %1067 = dma.done.wait [#allocation4], 1024  }
 0x231   :  { %1068 = vsyncadd [#allocation4], 4294966272 }
 0x232   :  { %842 = vsyncpa [#allocation3], 1 }
 0x233   :  { %843 = vsyncpa [#allocation6], 1 }
 0x234   :  { %844 = vsyncpa [#allocation4], 1 }

</bundles_post_ra>
